<compile_context>
chip_gen: v7x
topology: tpu7x:2x2x1
jax: 0.10.0
libtpu: 0.0.40
codegen_flags: <defaults>
</compile_context>

<pallas_src>
import jax
import jax.numpy as jnp
from jax.experimental import pallas as pl
from jax.experimental.pallas import tpu as pltpu

_LANES = 128


def _linear_kernel(params_ref, xT_ref, o_ref):
    # params_ref: SMEM (4,) f32 = [w0, w1, w2, b]  (scalar prefetch)
    # xT_ref:     VMEM (3, TB) f32  -- features on sublanes, batch on lanes
    # o_ref:      VMEM (1, TB) f32  -- lane-dense output
    w0 = params_ref[0]
    w1 = params_ref[1]
    w2 = params_ref[2]
    b = params_ref[3]
    o_ref[...] = (w0 * xT_ref[0:1, :]
                  + w1 * xT_ref[1:2, :]
                  + w2 * xT_ref[2:3, :]
                  + b)


def dqn_forward(x, weight, bias, *, max_tb=1024):
    """x: (B, 3) f32, weight: (1, 3) f32 (PyTorch convention), bias: (1,) f32.

    Returns (B, 1) f32, identical semantics to torch.nn.Linear(3, 1)."""
    B = x.shape[0]

    # Batch tile: a multiple of 128 lanes, capped at max_tb.
    tb = max(_LANES, min(max_tb, pl.cdiv(B, _LANES) * _LANES))
    Bp = pl.cdiv(B, tb) * tb  # padded batch, divisible by tb

    # Lane-major layout: (3, Bp), zero-padded on the batch (lane) axis.
    xT = jnp.pad(x.T.astype(jnp.float32), ((0, 0), (0, Bp - B)))

    # 4 scalars (3 weights + bias), scalar-prefetched into SMEM.
    params = jnp.concatenate(
        [weight.reshape(-1), bias.reshape(-1)]).astype(jnp.float32)  # (4,)

    out = pl.pallas_call(
        _linear_kernel,
        out_shape=jax.ShapeDtypeStruct((1, Bp), jnp.float32),
        grid_spec=pltpu.PrefetchScalarGridSpec(
            num_scalar_prefetch=1,
            grid=(Bp // tb,),
            in_specs=[pl.BlockSpec((3, tb), lambda i, p: (0, i))],
            out_specs=pl.BlockSpec((1, tb), lambda i, p: (0, i)),
        ),
        compiler_params=pltpu.CompilerParams(
            dimension_semantics=("parallel",)),
    )(params, xT)

    return out[0, :B].reshape(B, 1)


def init_params(key):
    """Deterministic init mimicking torch.nn.Linear(3, 1) default init."""
    k_w, k_b = jax.random.split(key)
    bound = 1.0 / jnp.sqrt(3.0)
    weight = jax.random.uniform(k_w, (1, 3), jnp.float32, -bound, bound)
    bias = jax.random.uniform(k_b, (1,), jnp.float32, -bound, bound)
    return weight, bias


if __name__ == "__main__":
    key = jax.random.PRNGKey(0)
    k_x, k_p, k_x2 = jax.random.split(key, 3)

    weight, bias = init_params(k_p)

    # Small batch of 3-dim pendulum states (matches the module's usage).
    B = 8
    x = jax.random.normal(k_x, (B, 3), jnp.float32)
    out = jax.block_until_ready(dqn_forward(x, weight, bias))
    ref = x @ weight.T + bias
    assert out.shape == (B, 1)
    assert jnp.allclose(out, ref, atol=1e-5, rtol=1e-5)

    # Also exercise the multi-tile (grid > 1) batched path.
    B2 = 2500
    x2 = jax.random.normal(k_x2, (B2, 3), jnp.float32)
    out2 = jax.block_until_ready(dqn_forward(x2, weight, bias))
    ref2 = x2 @ weight.T + bias
    assert out2.shape == (B2, 1)
    assert jnp.allclose(out2, ref2, atol=1e-5, rtol=1e-5)

    print("KERNEL_OK")
</pallas_src>

<mosaic_0001>
module attributes {stable_mosaic.version = 11 : i64} {
  func.func @_linear_kernel(%arg0: i32, %arg1: memref<4xf32, #tpu.memory_space<smem>>, %arg2: memref<3x128xf32, #tpu.memory_space<vmem>>, %arg3: memref<1x128xf32, #tpu.memory_space<vmem>>) attributes {dimension_semantics = [#tpu.dimension_semantics<parallel>], iteration_bounds = array<i64: 1>, scalar_prefetch = 1 : i64, scratch_operands = 0 : i64, tpu.core_type = #tpu.core_type<tc>, window_params = [{transform_indices = @transform_0, window_bounds = array<i64: 3, 128>}, {transform_indices = @transform_1, window_bounds = array<i64: 1, 128>}]} {
    %c0 = arith.constant 0 : index
    %0 = memref.load %arg1[%c0] : memref<4xf32, #tpu.memory_space<smem>>
    %c1 = arith.constant 1 : index
    %1 = memref.load %arg1[%c1] : memref<4xf32, #tpu.memory_space<smem>>
    %c2 = arith.constant 2 : index
    %2 = memref.load %arg1[%c2] : memref<4xf32, #tpu.memory_space<smem>>
    %c3 = arith.constant 3 : index
    %3 = memref.load %arg1[%c3] : memref<4xf32, #tpu.memory_space<smem>>
    %c0_0 = arith.constant 0 : index
    %c0_1 = arith.constant 0 : index
    %4 = vector.load %arg2[%c0_0, %c0_1] : memref<3x128xf32, #tpu.memory_space<vmem>>, vector<1x128xf32>
    %5 = vector.broadcast %0 : f32 to vector<1x128xf32>
    %6 = arith.mulf %5, %4 : vector<1x128xf32>
    %c1_2 = arith.constant 1 : index
    %c0_3 = arith.constant 0 : index
    %7 = vector.load %arg2[%c1_2, %c0_3] : memref<3x128xf32, #tpu.memory_space<vmem>>, vector<1x128xf32>
    %8 = vector.broadcast %1 : f32 to vector<1x128xf32>
    %9 = arith.mulf %8, %7 : vector<1x128xf32>
    %10 = arith.addf %6, %9 : vector<1x128xf32>
    %c2_4 = arith.constant 2 : index
    %c0_5 = arith.constant 0 : index
    %11 = vector.load %arg2[%c2_4, %c0_5] : memref<3x128xf32, #tpu.memory_space<vmem>>, vector<1x128xf32>
    %12 = vector.broadcast %2 : f32 to vector<1x128xf32>
    %13 = arith.mulf %12, %11 : vector<1x128xf32>
    %14 = arith.addf %10, %13 : vector<1x128xf32>
    %15 = vector.broadcast %3 : f32 to vector<1x128xf32>
    %16 = arith.addf %14, %15 : vector<1x128xf32>
    %c0_6 = arith.constant 0 : index
    %c0_7 = arith.constant 0 : index
    %17 = vector.load %arg3[%c0_6, %c0_7] : memref<1x128xf32, #tpu.memory_space<vmem>>, vector<1x128xf32>
    tpu.vector_store %arg3[%c0_6, %c0_7], %16 {strides = array<i32>} : memref<1x128xf32, #tpu.memory_space<vmem>>, vector<1x128xf32>,
    return
  }
  func.func @transform_0(%arg0: i32, %arg1: memref<4xf32, #tpu.memory_space<smem>>) -> (i32, i32) {
    %c0_i32 = arith.constant 0 : i32
    %c0_i32_0 = arith.constant 0 : i32
    return %c0_i32, %arg0 : i32, i32
  }
  func.func @transform_1(%arg0: i32, %arg1: memref<4xf32, #tpu.memory_space<smem>>) -> (i32, i32) {
    %c0_i32 = arith.constant 0 : i32
    %c0_i32_0 = arith.constant 0 : i32
    return %c0_i32, %arg0 : i32, i32
  }
}

</mosaic_0001>

<bundles_post_ra>
// kernel: tpu_custom_call.1
= control target key start
LH: loop header
LB: loop body
LE: loop exit
PB: predicated region body
PF: predicated region fallthrough
CT: control target
= control target key end

     0   :  { %s179_s0 = inlined_call_operand.hbm [shape: f32[4], index: 0, kind: input, shape index: {}]   ;;  %s180_s1 = inlined_call_operand.hbm [shape: f32[3,128], index: 1, kind: input, shape index: {}]   ;;  %s181_s2 = inlined_call_operand.hbm [shape: f32[1,128], index: 2, kind: output, shape index: {}]  }
   0x1   :  { %s65_s11 = scalar_lea.hbm %s179_s0, 16 }
   0x2   :  { %p66_p0 = scmp.ne.s32.totalorder %s179_s0, %s65_s11  ;;  %p69_p1 = scmp.lt.u32.totalorder %s65_s11, %s179_s0 }
   0x4   :  { %p71_p2 = pnand %p69_p1, %p66_p0 }
   0x6   :  { %74 = shalt.err (!%p71_p2)  }
   0x7   :  { %s125_s16 = smov [#allocation3]  }
   0x8   :  { %8 = dma.hbm_to_smem %s179_s0, 16, %s125_s16, [#allocation2] }
   0x9   :  { %119 = dma.done.wait [#allocation2], 16 }
   0xa   :  { %120 = vsyncadd [#allocation2], 4294967280 }
   0xb   :  { %10 = sfence }
   0xc   :  { %11 = vsyncpa [#allocation5], 0 }
   0xd   :  { %12 = vsyncpa [#allocation6], 0  ;;  %s126_s19 = smov [#allocation4]   ;;  %s75_s23 = scalar_lea.hbm %s180_s1, 64 }
   0xe   :  { %s19_s20 = sshll.u32 %s126_s19, 4  ;;  %p76_p3 = scmp.ne.s32.totalorder %s180_s1, %s75_s23  ;;  %s20_s20 = int_to_ptr.vmem [resolvable:$true] %s19_s20 }
   0xf   :  { %p79_p4 = scmp.lt.u32.totalorder %s75_s23, %s180_s1 }
  0x11   :  { %p81_p5 = pnand %p79_p4, %p76_p3 }
  0x13   :  { %84 = shalt.err (!%p81_p5)
}
  0x14   :  { %s85_s0 = scalar_lea.vmem %s20_s20, 64  ;;  %p90_p7 = scmp.lt.s32.totalorder %s20_s20, %s20_s20 }
  0x15   :  { %p86_p6 = scmp.ne.s32.totalorder %s20_s20, %s85_s0  ;;  %p91_p8 = scmp.lt.s32.totalorder %s85_s0, %s85_s0 }
  0x17   :  { %p92_p9 = por %p91_p8, %p90_p7 }
  0x19   :  { %p93_p10 = pnand %p92_p9, %p86_p6 }
  0x1b   :  { %96 = shalt.err (!%p93_p10)
}
  0x1c   :  { %22 = dma.hbm_to_vmem [thread:$0]  %s180_s1, 64, %s20_s20, [#allocation5]  }
  0x1d   :  { %121 = dma.done.wait [#allocation5], 64  }
  0x1e   :  { %122 = vsyncadd [#allocation5], 4294967232  ;;  %s26_s30 = sld [smem:[#allocation3]]  ;;  %s59_s3 = sld [smem:[#allocation3 + $0x1]]  ;;  %v30_v0 = vld [vmem:[#allocation4] sm:$0x1] }
  0x1f   :  { %s60_s4 = sld [smem:[#allocation3 + $0x2]]  ;;  %s61_s5 = sld [smem:[#allocation3 + $0x3]]  ;;  %v33_v2 = vld [vmem:[#allocation4 + $0x1] sm:$0x1]  ;;  %v37_v4 = vld [vmem:[#allocation4 + $0x2] sm:$0x1] }
  0x20   :  { %s127_s6 = smov [#allocation7]  }
  0x21   :  { %s50_s7 = sshll.u32 %s127_s6, 4  ;;  %s51_s7 = int_to_ptr.vmem [resolvable:$true] %s50_s7 }
  0x22   :  { %s97_s1 = scalar_lea.vmem %s51_s7, 16  ;;  %s101_s8 = scalar_lea.vmem %s51_s7, 32 }
  0x23   :  { %p98_p11 = scmp.ne.s32.totalorder %s51_s7, %s97_s1  ;;  %p102_p12 = scmp.lt.s32.totalorder %s51_s7, %s51_s7 }
  0x24   :  { %v31_v1 = vstv %s26_s30  ;;  %v34_v3 = vstv %s59_s3  ;;  %p103_p13 = scmp.lt.s32.totalorder %s101_s8, %s97_s1 }
  0x25   :  { %v32_v5 = vmul.f32 %v31_v1, %v30_v0  ;;  %v35_v6 = vmul.f32 %v34_v3, %v33_v2  ;;  %v38_v7 = vstv %s60_s4  ;;  %v41_v10 = vstv %s61_s5 }
  0x26   :  { %v39_v8 = vmul.f32 %v38_v7, %v37_v4  ;;  %p104_p0 = por %p103_p13, %p102_p12 }
  0x27   :  { %v36_v9 = vadd.f32 %v35_v6, %v32_v5 }
  0x28   :  { %p105_p1 = pnand %p104_p0, %p98_p11 }
  0x29   :  { %v40_v11 = vadd.f32 %v39_v8, %v36_v9 }
  0x2b   :  { %v42_v12 = vadd.f32 %v41_v10, %v40_v11 }
  0x2d   :  { %43 = vst [vmem:[#allocation7] sm:$0x1] %v42_v12 }
  0x2e   :  { %108 = shalt.err (!%p105_p1)
}
  0x2f   :  { %s109_s11 = scalar_lea.hbm %s181_s2, 16 }
  0x30   :  { %p110_p2 = scmp.ne.s32.totalorder %s181_s2, %s109_s11  ;;  %p113_p3 = scmp.lt.u32.totalorder %s109_s11, %s181_s2 }
  0x32   :  { %p115_p4 = pnand %p113_p3, %p110_p2 }
  0x34   :  { %118 = shalt.err (!%p115_p4)
}
  0x35   :  { %53 = dma.vmem_to_hbm [thread:$0]  %s51_s7, 16, %s181_s2, [#allocation6]  }
  0x36   :  { %123 = dma.done.wait [#allocation6], 16  }
  0x37   :  { %124 = vsyncadd [#allocation6], 4294967280 }
  0x38   :  { %57 = vsyncpa [#allocation5], 1 }
  0x39   :  { %58 = vsyncpa [#allocation6], 1 }

</bundles_post_ra>
